<compile_context>
chip_gen: v7x
topology: tpu7x:2x2x1
jax: 0.10.0
libtpu: 0.0.40
codegen_flags: <defaults>
</compile_context>

<pallas_src>
import functools

import jax
import jax.numpy as jnp
from jax.experimental import pallas as pl
from jax.experimental.pallas import tpu as pltpu


def _h_sigmoid_kernel(x_ref, o_ref):
    x = x_ref[...]
    # ReLU6(x + 3) / 6  ==  clamp(x + 3, 0, 6) * (1/6)   (math in input dtype)
    o_ref[...] = (jnp.clip(x + 3.0, 0.0, 6.0) * (1.0 / 6.0)).astype(o_ref.dtype)


def _reference(x):
    # Plain XLA path (ragged sizes / integer dtypes / empty tensors).
    return jnp.clip(x + 3.0, 0.0, 6.0) / 6.0


@functools.lru_cache(maxsize=None)
def _tile_budget():
    """(tile_bytes, vmem_limit_bytes or None), chosen per TPU generation."""
    try:
        vmem = int(pltpu.get_tpu_info().vmem_capacity_bytes)
    except Exception:
        # Unknown chip / emulator: keep the conservative, always-safe setting.
        return 2 * 1024 * 1024, None
    if vmem >= 96 * 1024 * 1024:
        # v5e / v6e: 128 MiB physical VMEM -> big tiles, raised scoped limit.
        return 8 * 1024 * 1024, 64 * 1024 * 1024
    # v7x: only 64 MiB physical VMEM per TC -> 6 MiB tiles, modest limit.
    return 6 * 1024 * 1024, 40 * 1024 * 1024


def _pick_cols(total):
    """Widest lane dim in {2048..128} that divides the element count."""
    for cand in (2048, 1024, 512, 256, 128):
        if total % cand == 0:
            return cand
    return None


def _pick_row_tile(rows, budget_rows, sublane, min_steps=2):
    """Largest sublane-aligned row tile that divides `rows` exactly.

    Prefers a tiling with >= min_steps grid steps (lets "parallel" shard the
    stream across v7x's two TensorCores). Returns None if no clean tiling
    exists (caller falls back to plain XLA).
    """

    def best_divisor(cap):
        cap = (min(cap, rows) // sublane) * sublane
        for tm in range(cap, 0, -sublane):
            if rows % tm == 0:
                return tm
        return None

    if rows >= min_steps * sublane:
        tm = best_divisor(min(budget_rows, rows // min_steps))
        if tm is not None:
            return tm
    tm = best_divisor(budget_rows)
    if tm is not None:
        return tm
    if rows <= budget_rows:
        return rows  # single full-dim block: always layout-legal
    return None


@jax.jit
def h_sigmoid(x: jax.Array) -> jax.Array:
    """Elementwise hard-sigmoid matching torch ReLU6(x+3)/6. Any shape/NCHW."""
    if x.size == 0 or not jnp.issubdtype(x.dtype, jnp.floating):
        return _reference(x)

    total = x.size
    itemsize = jnp.dtype(x.dtype).itemsize

    cols = _pick_cols(total)
    if cols is None:
        # Ragged element count: a fused XLA clip (1 HBM pass) beats
        # pad + kernel + slice (3 HBM passes).
        return _reference(x)

    rows = total // cols
    tile_bytes, vmem_limit = _tile_budget()
    sublane = 8 * (4 // itemsize) if itemsize < 4 else 8
    budget_rows = max(sublane, tile_bytes // (cols * itemsize))

    tm = _pick_row_tile(rows, budget_rows, sublane)
    if tm is None:
        return _reference(x)

    x2d = x.reshape(rows, cols)

    cp_kwargs = dict(dimension_semantics=("parallel",))
    if vmem_limit is not None:
        cp_kwargs["vmem_limit_bytes"] = vmem_limit

    out2d = pl.pallas_call(
        _h_sigmoid_kernel,
        out_shape=jax.ShapeDtypeStruct((rows, cols), x.dtype),
        grid=(rows // tm,),
        in_specs=[pl.BlockSpec((tm, cols), lambda i: (i, 0))],
        out_specs=pl.BlockSpec((tm, cols), lambda i: (i, 0)),
        compiler_params=pltpu.CompilerParams(**cp_kwargs),
        cost_estimate=pl.CostEstimate(
            flops=3 * total,
            transcendentals=0,
            bytes_accessed=2 * total * itemsize,
        ),
    )(x2d)

    return out2d.reshape(x.shape)


if __name__ == "__main__":
    key = jax.random.PRNGKey(0)
    k0, k1, k2, k3 = jax.random.split(key, 4)

    # Small NCHW input consistent with the conv-style module.
    x = jax.random.normal(k0, (2, 4, 16, 16), dtype=jnp.float32) * 4.0
    y = jax.block_until_ready(h_sigmoid(x))
    y_ref = jnp.clip(x + 3.0, 0.0, 6.0) / 6.0
    assert y.shape == x.shape and y.dtype == x.dtype
    assert float(jnp.max(jnp.abs(y - y_ref))) < 1e-6

    # Larger shape exercising the multi-step (row-tiled) grid path.
    x1 = jax.random.normal(k1, (2, 64, 64, 64), dtype=jnp.float32) * 4.0
    y1 = jax.block_until_ready(h_sigmoid(x1))
    y1_ref = jnp.clip(x1 + 3.0, 0.0, 6.0) / 6.0
    assert float(jnp.max(jnp.abs(y1 - y1_ref))) < 1e-6

    # Awkward (non-128-divisible) shape -> plain XLA fallback path (no pad).
    x2 = jax.random.normal(k2, (2, 3, 20, 20), dtype=jnp.float32) * 4.0
    y2 = jax.block_until_ready(h_sigmoid(x2))
    y2_ref = jnp.clip(x2 + 3.0, 0.0, 6.0) / 6.0
    assert y2.shape == x2.shape
    assert float(jnp.max(jnp.abs(y2 - y2_ref))) < 1e-6

    # bf16 path (sublane packing = 16); math stays in bf16 like the kernel doc says.
    x3 = (jax.random.normal(k3, (2, 8, 32, 32), dtype=jnp.float32) * 4.0).astype(
        jnp.bfloat16
    )
    y3 = jax.block_until_ready(h_sigmoid(x3))
    y3_ref = jnp.clip(x3.astype(jnp.float32) + 3.0, 0.0, 6.0) / 6.0
    assert y3.dtype == jnp.bfloat16
    assert float(jnp.max(jnp.abs(y3.astype(jnp.float32) - y3_ref))) < 1.5e-2

    print("KERNEL_OK")
</pallas_src>

<mosaic_0001>
module attributes {stable_mosaic.version = 11 : i64} {
  func.func @_h_sigmoid_kernel(%arg0: i32, %arg1: memref<1x2048xf32, #tpu.memory_space<vmem>>, %arg2: memref<1x2048xf32, #tpu.memory_space<vmem>>) attributes {dimension_semantics = [#tpu.dimension_semantics<parallel>], iteration_bounds = array<i64: 1>, scalar_prefetch = 0 : i64, scratch_operands = 0 : i64, tpu.core_type = #tpu.core_type<tc>, window_params = [{transform_indices = @transform_0, window_bounds = array<i64: 1, 2048>}, {transform_indices = @transform_1, window_bounds = array<i64: 1, 2048>}]} {
    %c0 = arith.constant 0 : index
    %c0_0 = arith.constant 0 : index
    %0 = vector.load %arg1[%c0, %c0_0] : memref<1x2048xf32, #tpu.memory_space<vmem>>, vector<1x2048xf32>
    %cst = arith.constant 3.000000e+00 : f32
    %1 = vector.broadcast %cst : f32 to vector<1x2048xf32>
    %2 = arith.addf %0, %1 : vector<1x2048xf32>
    %cst_1 = arith.constant 0.000000e+00 : f32
    %cst_2 = arith.constant 6.000000e+00 : f32
    %3 = vector.broadcast %cst_1 : f32 to vector<1x2048xf32>
    %4 = arith.maximumf %3, %2 : vector<1x2048xf32>
    %5 = vector.broadcast %cst_2 : f32 to vector<1x2048xf32>
    %6 = arith.minimumf %5, %4 : vector<1x2048xf32>
    %cst_3 = arith.constant 0.166666672 : f32
    %7 = vector.broadcast %cst_3 : f32 to vector<1x2048xf32>
    %8 = arith.mulf %6, %7 : vector<1x2048xf32>
    %c0_4 = arith.constant 0 : index
    %c0_5 = arith.constant 0 : index
    %9 = vector.load %arg2[%c0_4, %c0_5] : memref<1x2048xf32, #tpu.memory_space<vmem>>, vector<1x2048xf32>
    tpu.vector_store %arg2[%c0_4, %c0_5], %8 {strides = array<i32>} : memref<1x2048xf32, #tpu.memory_space<vmem>>, vector<1x2048xf32>,
    return
  }
  func.func @transform_0(%arg0: i32) -> (i32, i32) {
    %c0_i32 = arith.constant 0 : i32
    %c0_i32_0 = arith.constant 0 : i32
    return %arg0, %c0_i32 : i32, i32
  }
  func.func @transform_1(%arg0: i32) -> (i32, i32) {
    %c0_i32 = arith.constant 0 : i32
    %c0_i32_0 = arith.constant 0 : i32
    return %arg0, %c0_i32 : i32, i32
  }
}

</mosaic_0001>

<bundles_post_ra>
// kernel: h_sigmoid.1
= control target key start
LH: loop header
LB: loop body
LE: loop exit
PB: predicated region body
PF: predicated region fallthrough
CT: control target
= control target key end

     0   :  { %s46_s0 = inlined_call_operand.vmem [shape: f32[1,2048], index: 0, kind: input, shape index: {}]   ;;  %s47_s1 = inlined_call_operand.vmem [shape: f32[1,2048], index: 1, kind: output, shape index: {}]  }
   0x1   :  { %v8_v0 = vld [vmem:[%s46_s0] sm:$0xff]  ;;  %v9_v1 = vld [vmem:[%s46_s0 + $0x8] sm:$0xff] }
   0x2   :  { %v10_v2 = vadd.f32 3.0, %v8_v0  ;;  %v11_v3 = vadd.f32 3.0, %v9_v1 }
   0x4   :  { %v12_v4 = vmax.f32 %v10_v2, 0.0  ;;  %v13_v5 = vmax.f32 %v11_v3, 0.0 }
   0x6   :  { %v14_v6 = vmin.f32 %v12_v4, 6.0  ;;  %v15_v7 = vmin.f32 %v13_v5, 6.0 }
   0x8   :  { %v16_v8 = vmul.f32 0.16666667, %v14_v6  ;;  %v17_v9 = vmul.f32 0.16666667, %v15_v7 }
   0xa   :  { %18 = vst [vmem:[%s47_s1] sm:$0xff] %v16_v8  ;;  %19 = vst [vmem:[%s47_s1 + $0x8] sm:$0xff] %v17_v9 }

</bundles_post_ra>
